<compile_context>
chip_gen: v7x
topology: tpu7x:2x2x1
jax: 0.10.0
libtpu: 0.0.40
codegen_flags: <defaults>
</compile_context>

<pallas_src>
import functools

import jax
import jax.numpy as jnp
from jax.experimental import pallas as pl
from jax.experimental.pallas import tpu as pltpu


def _unified_focal_kernel(logits_ref, labels_ref,
                          focal_ref, tp_ref, cnt_ref, sump_ref,
                          focal_acc, tp_acc, cnt_acc, sump_acc,
                          *, delta, gamma, eps, hw, tile_hw, masked):
    t = pl.program_id(1)
    n_t = pl.num_programs(1)

    @pl.when(t == 0)
    def _init():
        focal_acc[...] = jnp.zeros_like(focal_acc)
        tp_acc[...] = jnp.zeros_like(tp_acc)
        cnt_acc[...] = jnp.zeros_like(cnt_acc)
        sump_acc[...] = jnp.zeros_like(sump_acc)

    x_raw = logits_ref[0].astype(jnp.float32)     # (C, tile_hw)
    labels = labels_ref[0]                        # (1, tile_hw) int32

    def accumulate(x, valid):
        # ---- per-pixel softmax over the channel (sublane) axis ----------
        m = jnp.max(x, axis=0, keepdims=True)
        e = jnp.exp(x - m)
        denom = jnp.sum(e, axis=0, keepdims=True)           # (1, tile_hw)
        r = pl.reciprocal(denom, approx=True)
        r = r * (2.0 - denom * r)                            # Newton step (VPU)
        p = e * r
        p = jnp.clip(p, eps, 1.0 - eps)

        # ---- one-hot via iota compare (no materialized one-hot tensor) --
        cls = jax.lax.broadcasted_iota(jnp.int32, x.shape, 0)
        onehot = cls == labels                               # (C, tile_hw) bool

        # ---- fused symmetric focal term: ONE log + ONE sqrt/pow ---------
        q = jnp.where(onehot, p, 1.0 - p)
        coef = jnp.where(onehot, -delta, -(1.0 - delta))
        if gamma == 0.5:
            mod = jnp.sqrt(1.0 - q)
        else:
            mod = (1.0 - q) ** gamma
        term = coef * mod * jnp.log(q + eps)

        onehot_f = onehot.astype(jnp.float32)
        if valid is None:
            tp_term = jnp.where(onehot, p, 0.0)
            p_sum = p
        else:
            term = term * valid
            onehot_f = onehot_f * valid
            tp_term = onehot_f * p
            p_sum = p * valid

        # ---- per-step lane reductions into tiny (C,1) accumulators ------
        focal_acc[...] += jnp.sum(term, axis=1, keepdims=True)
        tp_acc[...] += jnp.sum(tp_term, axis=1, keepdims=True)
        cnt_acc[...] += jnp.sum(onehot_f, axis=1, keepdims=True)
        sump_acc[...] += jnp.sum(p_sum, axis=1, keepdims=True)

    if masked:
        # Full tiles: no masking overhead.
        @pl.when(t < n_t - 1)
        def _full():
            accumulate(x_raw, None)

        # Only the last tile has invalid lanes; sanitize logits (OOB reads are
        # unspecified) and mask every accumulated quantity.
        @pl.when(t == n_t - 1)
        def _partial():
            lane = jax.lax.broadcasted_iota(jnp.int32, (1, tile_hw), 1)
            valid_b = (t * tile_hw + lane) < hw
            valid = valid_b.astype(jnp.float32)
            x = jnp.where(valid_b, x_raw, 0.0)
            accumulate(x, valid)
    else:
        accumulate(x_raw, None)

    # ---- write per-(batch, class) partials once per batch -------------------
    @pl.when(t == n_t - 1)
    def _finalize():
        focal_ref[0] = focal_acc[...]
        tp_ref[0] = tp_acc[...]
        cnt_ref[0] = cnt_acc[...]
        sump_ref[0] = sump_acc[...]


def symmetric_unified_focal_loss(y_pred, y_true, *, weight=0.5, delta=0.6,
                                 gamma=0.5, num_classes=None, tile_hw=None):
    """y_pred: (B, C, H, W) raw logits (f32 or bf16 -- bf16 halves HBM traffic).
    y_true: (B, H, W) integer class indices."""
    B, C, H, W = y_pred.shape
    if num_classes is None:
        num_classes = C
    assert num_classes == C, "one-hot channels must match y_pred channels"
    HW = H * W
    eps = 1e-6

    logits = y_pred.reshape(B, C, HW)
    labels = y_true.astype(jnp.int32).reshape(B, 1, HW)

    # Tiny-image fallback: the lane axis must span at least one 128-lane tile.
    if HW < 128:
        pad = 128 - HW
        logits = jnp.pad(logits, ((0, 0), (0, 0), (0, pad)))
        labels = jnp.pad(labels, ((0, 0), (0, 0), (0, pad)))
        hw_arr = 128
    else:
        hw_arr = HW

    # Auto-size the spatial tile to a VMEM budget (double-buffered inputs),
    # lane-aligned, capped at 32768 lanes.
    itemsize = jnp.dtype(y_pred.dtype).itemsize
    bytes_per_lane = 2 * (C * itemsize + 4)          # 2 bufs: logits + labels
    budget = 8 * 1024 * 1024
    max_tile = max(128, (budget // bytes_per_lane) // 128 * 128)
    hw_lane = ((hw_arr + 127) // 128) * 128
    if tile_hw is None:
        tile_hw = 32768
    tile_hw = max(128, min((tile_hw // 128) * 128, max_tile, hw_lane))

    n_t = pl.cdiv(hw_arr, tile_hw)
    masked = (hw_arr % tile_hw != 0) or (hw_arr != HW)

    kernel = functools.partial(_unified_focal_kernel,
                               delta=delta, gamma=gamma, eps=eps,
                               hw=HW, tile_hw=tile_hw, masked=masked)

    part_shape = jax.ShapeDtypeStruct((B, C, 1), jnp.float32)
    part_spec = pl.BlockSpec((1, C, 1), lambda b, t: (b, 0, 0))

    focal_p, tp_p, cnt_p, sump_p = pl.pallas_call(
        kernel,
        out_shape=(part_shape, part_shape, part_shape, part_shape),
        grid_spec=pltpu.PrefetchScalarGridSpec(
            num_scalar_prefetch=0,
            grid=(B, n_t),
            in_specs=[
                pl.BlockSpec((1, C, tile_hw), lambda b, t: (b, 0, t)),
                pl.BlockSpec((1, 1, tile_hw), lambda b, t: (b, 0, t)),
            ],
            out_specs=(part_spec, part_spec, part_spec, part_spec),
            scratch_shapes=[
                pltpu.VMEM((C, 1), jnp.float32),   # focal_acc
                pltpu.VMEM((C, 1), jnp.float32),   # tp_acc
                pltpu.VMEM((C, 1), jnp.float32),   # cnt_acc
                pltpu.VMEM((C, 1), jnp.float32),   # sump_acc
            ],
        ),
        compiler_params=pltpu.CompilerParams(
            dimension_semantics=("parallel", "arbitrary"),
            vmem_limit_bytes=32 * 1024 * 1024),
    )(logits, labels)

    # ---- cheap finalization on (B, C) partials in plain JAX ------------------
    focal_mean = jnp.sum(focal_p) / (B * C * HW)          # mean over all elems
    tp = tp_p[..., 0]
    fn = cnt_p[..., 0] - tp
    fp = sump_p[..., 0] - tp
    tversky = (tp + eps) / (tp + delta * fn + (1.0 - delta) * fp + eps)
    base = jnp.maximum(1.0 - tversky, 0.0)
    t_loss = jnp.sqrt(base) if gamma == 0.5 else base ** gamma
    tversky_mean = jnp.mean(t_loss)                        # mean over (B, C)
    return weight * tversky_mean + (1.0 - weight) * focal_mean


def _reference(y_pred, y_true, *, weight=0.5, delta=0.6, gamma=0.5):
    """Pure-JAX reference mirroring the PyTorch module (for validation)."""
    eps = 1e-6
    B, C, H, W = y_pred.shape
    p = jax.nn.softmax(y_pred.astype(jnp.float32), axis=1)
    p = jnp.clip(p, eps, 1.0 - eps)
    onehot = jax.nn.one_hot(y_true, C, axis=1, dtype=jnp.float32)
    pos = -delta * (1.0 - p) ** gamma * onehot * jnp.log(p + eps)
    neg = -(1.0 - delta) * p ** gamma * (1.0 - onehot) * jnp.log(1.0 - p + eps)
    focal = jnp.mean(pos + neg)
    pf = p.reshape(B, C, -1)
    of = onehot.reshape(B, C, -1)
    tp = jnp.sum(of * pf, axis=2)
    fn = jnp.sum(of * (1.0 - pf), axis=2)
    fp = jnp.sum((1.0 - of) * pf, axis=2)
    tv = (tp + eps) / (tp + delta * fn + (1.0 - delta) * fp + eps)
    tloss = jnp.mean(jnp.maximum(1.0 - tv, 0.0) ** gamma)
    return weight * tloss + (1.0 - weight) * focal


if __name__ == "__main__":
    key = jax.random.PRNGKey(0)
    k1, k2, k3, k4, k5, k6 = jax.random.split(key, 6)

    def _check(loss, ref):
        assert jnp.isfinite(loss), float(loss)
        assert abs(float(loss) - float(ref)) < 1e-3 * max(1.0, abs(float(ref))), (
            float(loss), float(ref))

    # Case 1: module-default num_classes=20, tile-aligned HW
    # (multi-tile accumulation path, no masking).
    B, C, H, W = 2, 20, 16, 16
    y_pred = jax.random.normal(k1, (B, C, H, W), dtype=jnp.float32)
    y_true = jax.random.randint(k2, (B, H, W), 0, C, dtype=jnp.int32)
    loss = jax.block_until_ready(
        symmetric_unified_focal_loss(y_pred, y_true, weight=0.5, delta=0.6,
                                     gamma=0.5, num_classes=C, tile_hw=128))
    _check(loss, _reference(y_pred, y_true, weight=0.5, delta=0.6, gamma=0.5))

    # Case 2: non-tile-aligned HW (18*18 = 2 full tiles + 1 partial):
    # exercises the in-kernel masked last-tile path with NO wrapper padding.
    B2, C2, H2, W2 = 2, 4, 18, 18
    y_pred2 = jax.random.normal(k3, (B2, C2, H2, W2), dtype=jnp.float32)
    y_true2 = jax.random.randint(k4, (B2, H2, W2), 0, C2, dtype=jnp.int32)
    loss2 = jax.block_until_ready(
        symmetric_unified_focal_loss(y_pred2, y_true2, weight=0.5, delta=0.6,
                                     gamma=0.5, num_classes=C2, tile_hw=128))
    _check(loss2, _reference(y_pred2, y_true2, weight=0.5, delta=0.6, gamma=0.5))

    # Case 3: bf16 logits (in-kernel upcast), auto tile sizing, HW < 128
    # (tiny-image fallback path).
    B3, C3, H3, W3 = 1, 4, 8, 8
    y_pred3 = jax.random.normal(k5, (B3, C3, H3, W3), dtype=jnp.bfloat16)
    y_true3 = jax.random.randint(k6, (B3, H3, W3), 0, C3, dtype=jnp.int32)
    loss3 = jax.block_until_ready(
        symmetric_unified_focal_loss(y_pred3, y_true3, weight=0.5, delta=0.6,
                                     gamma=0.5, num_classes=C3))
    _check(loss3, _reference(y_pred3.astype(jnp.float32), y_true3,
                             weight=0.5, delta=0.6, gamma=0.5))

    print("KERNEL_OK")
</pallas_src>

<mosaic_0001>
module attributes {stable_mosaic.version = 11 : i64} {
  func.func @_unified_focal_kernel(%arg0: i32, %arg1: i32, %arg2: memref<1x20x128xf32, #tpu.memory_space<vmem>>, %arg3: memref<1x1x128xi32, #tpu.memory_space<vmem>>, %arg4: memref<1x20x1xf32, #tpu.memory_space<vmem>>, %arg5: memref<1x20x1xf32, #tpu.memory_space<vmem>>, %arg6: memref<1x20x1xf32, #tpu.memory_space<vmem>>, %arg7: memref<1x20x1xf32, #tpu.memory_space<vmem>>, %arg8: memref<20x1xf32, #tpu.memory_space<vmem>>, %arg9: memref<20x1xf32, #tpu.memory_space<vmem>>, %arg10: memref<20x1xf32, #tpu.memory_space<vmem>>, %arg11: memref<20x1xf32, #tpu.memory_space<vmem>>) attributes {dimension_semantics = [#tpu.dimension_semantics<parallel>, #tpu.dimension_semantics<arbitrary>], iteration_bounds = array<i64: 2, 2>, scalar_prefetch = 0 : i64, scratch_operands = 4 : i64, tpu.core_type = #tpu.core_type<tc>, window_params = [{transform_indices = @transform_0, window_bounds = array<i64: 1, 20, 128>}, {transform_indices = @transform_1, window_bounds = array<i64: 1, 1, 128>}, {transform_indices = @transform_2, window_bounds = array<i64: 1, 20, 1>}, {transform_indices = @transform_3, window_bounds = array<i64: 1, 20, 1>}, {transform_indices = @transform_4, window_bounds = array<i64: 1, 20, 1>}, {transform_indices = @transform_5, window_bounds = array<i64: 1, 20, 1>}]} {
    %c0_i32 = arith.constant 0 : i32
    %0 = arith.cmpi eq, %arg1, %c0_i32 : i32
    %1 = arith.extui %0 : i1 to i32
    %c0_i32_0 = arith.constant 0 : i32
    %2 = arith.cmpi ne, %1, %c0_i32_0 : i32
    scf.if %2 {
      %cst_37 = arith.constant 0.000000e+00 : f32
      %69 = vector.broadcast %cst_37 : f32 to vector<20x1xf32>
      %c0_38 = arith.constant 0 : index
      %c0_39 = arith.constant 0 : index
      %70 = vector.load %arg8[%c0_38, %c0_39] : memref<20x1xf32, #tpu.memory_space<vmem>>, vector<20x1xf32>
      tpu.vector_store %arg8[%c0_38, %c0_39], %69 {strides = array<i32>} : memref<20x1xf32, #tpu.memory_space<vmem>>, vector<20x1xf32>,
      %cst_40 = arith.constant 0.000000e+00 : f32
      %71 = vector.broadcast %cst_40 : f32 to vector<20x1xf32>
      %c0_41 = arith.constant 0 : index
      %c0_42 = arith.constant 0 : index
      %72 = vector.load %arg9[%c0_41, %c0_42] : memref<20x1xf32, #tpu.memory_space<vmem>>, vector<20x1xf32>
      tpu.vector_store %arg9[%c0_41, %c0_42], %71 {strides = array<i32>} : memref<20x1xf32, #tpu.memory_space<vmem>>, vector<20x1xf32>,
      %cst_43 = arith.constant 0.000000e+00 : f32
      %73 = vector.broadcast %cst_43 : f32 to vector<20x1xf32>
      %c0_44 = arith.constant 0 : index
      %c0_45 = arith.constant 0 : index
      %74 = vector.load %arg10[%c0_44, %c0_45] : memref<20x1xf32, #tpu.memory_space<vmem>>, vector<20x1xf32>
      tpu.vector_store %arg10[%c0_44, %c0_45], %73 {strides = array<i32>} : memref<20x1xf32, #tpu.memory_space<vmem>>, vector<20x1xf32>,
      %cst_46 = arith.constant 0.000000e+00 : f32
      %75 = vector.broadcast %cst_46 : f32 to vector<20x1xf32>
      %c0_47 = arith.constant 0 : index
      %c0_48 = arith.constant 0 : index
      %76 = vector.load %arg11[%c0_47, %c0_48] : memref<20x1xf32, #tpu.memory_space<vmem>>, vector<20x1xf32>
      tpu.vector_store %arg11[%c0_47, %c0_48], %75 {strides = array<i32>} : memref<20x1xf32, #tpu.memory_space<vmem>>, vector<20x1xf32>,
    } else {
    }
    %c0 = arith.constant 0 : index
    %c0_1 = arith.constant 0 : index
    %c0_2 = arith.constant 0 : index
    %3 = vector.load %arg2[%c0, %c0_1, %c0_2] : memref<1x20x128xf32, #tpu.memory_space<vmem>>, vector<1x20x128xf32>
    %4 = vector.shape_cast %3 : vector<1x20x128xf32> to vector<20x128xf32>
    %c0_3 = arith.constant 0 : index
    %c0_4 = arith.constant 0 : index
    %c0_5 = arith.constant 0 : index
    %5 = vector.load %arg3[%c0_3, %c0_4, %c0_5] : memref<1x1x128xi32, #tpu.memory_space<vmem>>, vector<1x1x128xi32>
    %6 = vector.shape_cast %5 : vector<1x1x128xi32> to vector<1x128xi32>
    %cst = arith.constant dense<0xFF800000> : vector<128xf32>
    %7 = vector.multi_reduction <maximumf>, %4, %cst [0] : vector<20x128xf32> to vector<128xf32>
    %8 = vector.shape_cast %7 : vector<128xf32> to vector<1x128xf32>
    %9 = vector.broadcast %8 : vector<1x128xf32> to vector<20x128xf32>
    %10 = arith.subf %4, %9 : vector<20x128xf32>
    %11 = math.exp %10 : vector<20x128xf32>
    %cst_6 = arith.constant dense<0.000000e+00> : vector<128xf32>
    %12 = vector.multi_reduction <add>, %11, %cst_6 [0] : vector<20x128xf32> to vector<128xf32>
    %13 = vector.shape_cast %12 : vector<128xf32> to vector<1x128xf32>
    %14 = tpu.reciprocal %13 {approx = true} : vector<1x128xf32> -> vector<1x128xf32>
    %15 = arith.mulf %13, %14 : vector<1x128xf32>
    %cst_7 = arith.constant 2.000000e+00 : f32
    %16 = vector.broadcast %cst_7 : f32 to vector<1x128xf32>
    %17 = arith.subf %16, %15 : vector<1x128xf32>
    %18 = arith.mulf %14, %17 : vector<1x128xf32>
    %19 = vector.broadcast %18 : vector<1x128xf32> to vector<20x128xf32>
    %20 = arith.mulf %11, %19 : vector<20x128xf32>
    %cst_8 = arith.constant 9.99999997E-7 : f32
    %cst_9 = arith.constant 0.999998986 : f32
    %21 = vector.broadcast %cst_8 : f32 to vector<20x128xf32>
    %22 = arith.maximumf %21, %20 : vector<20x128xf32>
    %23 = vector.broadcast %cst_9 : f32 to vector<20x128xf32>
    %24 = arith.minimumf %23, %22 : vector<20x128xf32>
    %25 = tpu.iota {dimensions = array<i32: 0>} : vector<20x128xi32>
    %26 = vector.broadcast %6 : vector<1x128xi32> to vector<20x128xi32>
    %27 = arith.cmpi eq, %25, %26 : vector<20x128xi32>
    %cst_10 = arith.constant 1.000000e+00 : f32
    %28 = vector.broadcast %cst_10 : f32 to vector<20x128xf32>
    %29 = arith.subf %28, %24 : vector<20x128xf32>
    %30 = arith.select %27, %24, %29 : vector<20x128xi1>, vector<20x128xf32>
    %cst_11 = arith.constant -6.000000e-01 : f32
    %cst_12 = arith.constant -4.000000e-01 : f32
    %31 = vector.broadcast %cst_11 : f32 to vector<20x128xf32>
    %32 = vector.broadcast %cst_12 : f32 to vector<20x128xf32>
    %33 = arith.select %27, %31, %32 : vector<20x128xi1>, vector<20x128xf32>
    %cst_13 = arith.constant 1.000000e+00 : f32
    %34 = vector.broadcast %cst_13 : f32 to vector<20x128xf32>
    %35 = arith.subf %34, %30 : vector<20x128xf32>
    %36 = math.sqrt %35 : vector<20x128xf32>
    %37 = arith.mulf %33, %36 : vector<20x128xf32>
    %cst_14 = arith.constant 9.99999997E-7 : f32
    %38 = vector.broadcast %cst_14 : f32 to vector<20x128xf32>
    %39 = arith.addf %30, %38 : vector<20x128xf32>
    %40 = math.log %39 : vector<20x128xf32>
    %41 = arith.mulf %37, %40 : vector<20x128xf32>
    %42 = arith.extui %27 : vector<20x128xi1> to vector<20x128xi32>
    %43 = arith.sitofp %42 : vector<20x128xi32> to vector<20x128xf32>
    %cst_15 = arith.constant 0.000000e+00 : f32
    %44 = vector.broadcast %cst_15 : f32 to vector<20x128xf32>
    %45 = arith.select %27, %24, %44 : vector<20x128xi1>, vector<20x128xf32>
    %c0_16 = arith.constant 0 : index
    %c0_17 = arith.constant 0 : index
    %46 = vector.load %arg8[%c0_16, %c0_17] : memref<20x1xf32, #tpu.memory_space<vmem>>, vector<20x1xf32>
    %cst_18 = arith.constant dense<0.000000e+00> : vector<20xf32>
    %47 = vector.multi_reduction <add>, %41, %cst_18 [1] : vector<20x128xf32> to vector<20xf32>
    %48 = vector.shape_cast %47 : vector<20xf32> to vector<20x1xf32>
    %49 = arith.addf %46, %48 : vector<20x1xf32>
    %c0_19 = arith.constant 0 : index
    %c0_20 = arith.constant 0 : index
    %50 = vector.load %arg8[%c0_19, %c0_20] : memref<20x1xf32, #tpu.memory_space<vmem>>, vector<20x1xf32>
    tpu.vector_store %arg8[%c0_19, %c0_20], %49 {strides = array<i32>} : memref<20x1xf32, #tpu.memory_space<vmem>>, vector<20x1xf32>,
    %c0_21 = arith.constant 0 : index
    %c0_22 = arith.constant 0 : index
    %51 = vector.load %arg9[%c0_21, %c0_22] : memref<20x1xf32, #tpu.memory_space<vmem>>, vector<20x1xf32>
    %cst_23 = arith.constant dense<0.000000e+00> : vector<20xf32>
    %52 = vector.multi_reduction <add>, %45, %cst_23 [1] : vector<20x128xf32> to vector<20xf32>
    %53 = vector.shape_cast %52 : vector<20xf32> to vector<20x1xf32>
    %54 = arith.addf %51, %53 : vector<20x1xf32>
    %c0_24 = arith.constant 0 : index
    %c0_25 = arith.constant 0 : index
    %55 = vector.load %arg9[%c0_24, %c0_25] : memref<20x1xf32, #tpu.memory_space<vmem>>, vector<20x1xf32>
    tpu.vector_store %arg9[%c0_24, %c0_25], %54 {strides = array<i32>} : memref<20x1xf32, #tpu.memory_space<vmem>>, vector<20x1xf32>,
    %c0_26 = arith.constant 0 : index
    %c0_27 = arith.constant 0 : index
    %56 = vector.load %arg10[%c0_26, %c0_27] : memref<20x1xf32, #tpu.memory_space<vmem>>, vector<20x1xf32>
    %cst_28 = arith.constant dense<0.000000e+00> : vector<20xf32>
    %57 = vector.multi_reduction <add>, %43, %cst_28 [1] : vector<20x128xf32> to vector<20xf32>
    %58 = vector.shape_cast %57 : vector<20xf32> to vector<20x1xf32>
    %59 = arith.addf %56, %58 : vector<20x1xf32>
    %c0_29 = arith.constant 0 : index
    %c0_30 = arith.constant 0 : index
    %60 = vector.load %arg10[%c0_29, %c0_30] : memref<20x1xf32, #tpu.memory_space<vmem>>, vector<20x1xf32>
    tpu.vector_store %arg10[%c0_29, %c0_30], %59 {strides = array<i32>} : memref<20x1xf32, #tpu.memory_space<vmem>>, vector<20x1xf32>,
    %c0_31 = arith.constant 0 : index
    %c0_32 = arith.constant 0 : index
    %61 = vector.load %arg11[%c0_31, %c0_32] : memref<20x1xf32, #tpu.memory_space<vmem>>, vector<20x1xf32>
    %cst_33 = arith.constant dense<0.000000e+00> : vector<20xf32>
    %62 = vector.multi_reduction <add>, %24, %cst_33 [1] : vector<20x128xf32> to vector<20xf32>
    %63 = vector.shape_cast %62 : vector<20xf32> to vector<20x1xf32>
    %64 = arith.addf %61, %63 : vector<20x1xf32>
    %c0_34 = arith.constant 0 : index
    %c0_35 = arith.constant 0 : index
    %65 = vector.load %arg11[%c0_34, %c0_35] : memref<20x1xf32, #tpu.memory_space<vmem>>, vector<20x1xf32>
    tpu.vector_store %arg11[%c0_34, %c0_35], %64 {strides = array<i32>} : memref<20x1xf32, #tpu.memory_space<vmem>>, vector<20x1xf32>,
    %c1_i32 = arith.constant 1 : i32
    %66 = arith.cmpi eq, %arg1, %c1_i32 : i32
    %67 = arith.extui %66 : i1 to i32
    %c0_i32_36 = arith.constant 0 : i32
    %68 = arith.cmpi ne, %67, %c0_i32_36 : i32
    scf.if %68 {
      %c0_37 = arith.constant 0 : index
      %c0_38 = arith.constant 0 : index
      %69 = vector.load %arg8[%c0_37, %c0_38] : memref<20x1xf32, #tpu.memory_space<vmem>>, vector<20x1xf32>
      %c0_39 = arith.constant 0 : index
      %c0_40 = arith.constant 0 : index
      %c0_41 = arith.constant 0 : index
      %70 = vector.load %arg4[%c0_39, %c0_40, %c0_41] : memref<1x20x1xf32, #tpu.memory_space<vmem>>, vector<1x20x1xf32>
      %71 = vector.shape_cast %70 : vector<1x20x1xf32> to vector<20x1xf32>
      %72 = vector.shape_cast %69 : vector<20x1xf32> to vector<1x20x1xf32>
      tpu.vector_store %arg4[%c0_39, %c0_40, %c0_41], %72 {strides = array<i32>} : memref<1x20x1xf32, #tpu.memory_space<vmem>>, vector<1x20x1xf32>,
      %c0_42 = arith.constant 0 : index
      %c0_43 = arith.constant 0 : index
      %73 = vector.load %arg9[%c0_42, %c0_43] : memref<20x1xf32, #tpu.memory_space<vmem>>, vector<20x1xf32>
      %c0_44 = arith.constant 0 : index
      %c0_45 = arith.constant 0 : index
      %c0_46 = arith.constant 0 : index
      %74 = vector.load %arg5[%c0_44, %c0_45, %c0_46] : memref<1x20x1xf32, #tpu.memory_space<vmem>>, vector<1x20x1xf32>
      %75 = vector.shape_cast %74 : vector<1x20x1xf32> to vector<20x1xf32>
      %76 = vector.shape_cast %73 : vector<20x1xf32> to vector<1x20x1xf32>
      tpu.vector_store %arg5[%c0_44, %c0_45, %c0_46], %76 {strides = array<i32>} : memref<1x20x1xf32, #tpu.memory_space<vmem>>, vector<1x20x1xf32>,
      %c0_47 = arith.constant 0 : index
      %c0_48 = arith.constant 0 : index
      %77 = vector.load %arg10[%c0_47, %c0_48] : memref<20x1xf32, #tpu.memory_space<vmem>>, vector<20x1xf32>
      %c0_49 = arith.constant 0 : index
      %c0_50 = arith.constant 0 : index
      %c0_51 = arith.constant 0 : index
      %78 = vector.load %arg6[%c0_49, %c0_50, %c0_51] : memref<1x20x1xf32, #tpu.memory_space<vmem>>, vector<1x20x1xf32>
      %79 = vector.shape_cast %78 : vector<1x20x1xf32> to vector<20x1xf32>
      %80 = vector.shape_cast %77 : vector<20x1xf32> to vector<1x20x1xf32>
      tpu.vector_store %arg6[%c0_49, %c0_50, %c0_51], %80 {strides = array<i32>} : memref<1x20x1xf32, #tpu.memory_space<vmem>>, vector<1x20x1xf32>,
      %c0_52 = arith.constant 0 : index
      %c0_53 = arith.constant 0 : index
      %81 = vector.load %arg11[%c0_52, %c0_53] : memref<20x1xf32, #tpu.memory_space<vmem>>, vector<20x1xf32>
      %c0_54 = arith.constant 0 : index
      %c0_55 = arith.constant 0 : index
      %c0_56 = arith.constant 0 : index
      %82 = vector.load %arg7[%c0_54, %c0_55, %c0_56] : memref<1x20x1xf32, #tpu.memory_space<vmem>>, vector<1x20x1xf32>
      %83 = vector.shape_cast %82 : vector<1x20x1xf32> to vector<20x1xf32>
      %84 = vector.shape_cast %81 : vector<20x1xf32> to vector<1x20x1xf32>
      tpu.vector_store %arg7[%c0_54, %c0_55, %c0_56], %84 {strides = array<i32>} : memref<1x20x1xf32, #tpu.memory_space<vmem>>, vector<1x20x1xf32>,
    } else {
    }
    return
  }
  func.func @transform_0(%arg0: i32, %arg1: i32) -> (i32, i32, i32) {
    %c0_i32 = arith.constant 0 : i32
    %c0_i32_0 = arith.constant 0 : i32
    return %arg0, %c0_i32, %arg1 : i32, i32, i32
  }
  func.func @transform_1(%arg0: i32, %arg1: i32) -> (i32, i32, i32) {
    %c0_i32 = arith.constant 0 : i32
    %c0_i32_0 = arith.constant 0 : i32
    return %arg0, %c0_i32, %arg1 : i32, i32, i32
  }
  func.func @transform_2(%arg0: i32, %arg1: i32) -> (i32, i32, i32) {
    %c0_i32 = arith.constant 0 : i32
    %c0_i32_0 = arith.constant 0 : i32
    %c0_i32_1 = arith.constant 0 : i32
    return %arg0, %c0_i32, %c0_i32_0 : i32, i32, i32
  }
  func.func @transform_3(%arg0: i32, %arg1: i32) -> (i32, i32, i32) {
    %c0_i32 = arith.constant 0 : i32
    %c0_i32_0 = arith.constant 0 : i32
    %c0_i32_1 = arith.constant 0 : i32
    return %arg0, %c0_i32, %c0_i32_0 : i32, i32, i32
  }
  func.func @transform_4(%arg0: i32, %arg1: i32) -> (i32, i32, i32) {
    %c0_i32 = arith.constant 0 : i32
    %c0_i32_0 = arith.constant 0 : i32
    %c0_i32_1 = arith.constant 0 : i32
    return %arg0, %c0_i32, %c0_i32_0 : i32, i32, i32
  }
  func.func @transform_5(%arg0: i32, %arg1: i32) -> (i32, i32, i32) {
    %c0_i32 = arith.constant 0 : i32
    %c0_i32_0 = arith.constant 0 : i32
    %c0_i32_1 = arith.constant 0 : i32
    return %arg0, %c0_i32, %c0_i32_0 : i32, i32, i32
  }
}

</mosaic_0001>

<bundles_post_ra>
// kernel: tpu_custom_call.1
= control target key start
LH: loop header
LB: loop body
LE: loop exit
PB: predicated region body
PF: predicated region fallthrough
CT: control target
= control target key end

     0   :  { %s952_s18 = smov 0   ;;  %s954_s19 = smov 0   ;;  %s1174_s0 = inlined_call_operand.vmem [shape: f32[2,20,256], index: 0, kind: input, shape index: {}]   ;;  %s1175_s1 = inlined_call_operand.vmem [shape: s32[2,1,256], index: 1, kind: input, shape index: {}]   ;;  %s1176_s2 = inlined_call_operand.vmem [shape: f32[2,20,1], index: 2, kind: output, shape index: {0}]   ;;  %s1177_s3 = inlined_call_operand.vmem [shape: f32[2,20,1], index: 3, kind: output, shape index: {1}]   ;;  %s1178_s4 = inlined_call_operand.vmem [shape: f32[2,20,1], index: 4, kind: output, shape index: {2}]   ;;  %s1179_s5 = inlined_call_operand.vmem [shape: f32[2,20,1], index: 5, kind: output, shape index: {3}]  }
   0x1   :  { %s956_s20 = smov 0   ;;  %s958_s21 = smov 0  }
   0x2   :  { %s960_s22 = smov 0   ;;  %s962_s23 = smov 0  }
   0x3   :  { %s964_s24 = smov 0  }
   0x4 LB: > { %s25_s25 = sadd.s32 1, %s909_s22  ;;  %s28_s26 = sadd.s32 1, %s913_s23  ;;  %s917_s24 = sphi %s964_s24, %s16_s24   ;;  %s913_s23 = sphi %s962_s23, %s1185_s23   ;;  %s909_s22 = sphi %s960_s22, %s1184_s22   ;;  %s905_s21 = sphi %s958_s21, %s1183_s21   ;;  %s901_s20 = sphi %s956_s20, %s1182_s20   ;;  %s897_s19 = sphi %s954_s19, %s1181_s19   ;;  %s893_s18 = sphi %s952_s18, %s1180_s18  }
   0x5   : > { %p26_p0 = scmp.ge.s32.totalorder %s25_s25, 2  ;;  %p44_p1 = scmp.ne.s32.totalorder %s897_s19, %s893_s18 }
   0x6   : > { %p45_p2 = scmp.eq.s32.totalorder %s917_s24, 0  ;;  %s37_s30 = sadd.s32 1, %s897_s19 }
   0x7   : > { %s1187_s25 = smov (%p26_p0, %s25_s25), 0  ;;  %s1189_s26 = smov (!%p26_p0, %s28_s26), %s913_s23 }
   0x8   : > { %p46_p3 = por %p45_p2, %p44_p1  ;;  %p30_p4 = scmp.ge.s32.totalorder %s1189_s26, 2 }
   0x9   : > { %s33_s27 = ssub.s32 %s909_s22, %s1187_s25  ;;  %p764_p6 = scmp.ge.s32.totalorder %s917_s24, 4 }
   0xa   : > { %s1191_s26 = smov (%p30_p4, %s1189_s26), 0 }
   0xb   : > { %s32_s28 = ssub.s32 %s913_s23, %s1191_s26  ;;  %202 = sbr.rel (%p764_p6) target bundleno = 27 (0x1b), region = 16 }
   0xc   : > { %s34_s29 = sor.u32 %s33_s27, %s32_s28 }
   0xd   : > { %p35_p5 = scmp.eq.s32.totalorder %s34_s29, 0 }
   0xf   : > { %s1003_s6 = scalar_select %p35_p5, %s897_s19, %s37_s30  }
  0x12   : > { %205 = sbr.rel (!%p46_p3) target bundleno = 27 (0x1b), region = 20  ;;  %s207_s7 = sand.u32 (%p46_p3), 1, %s897_s19  }
  0x13   : > { %s781_s8 = smul.u32 (%p46_p3), 6, %s913_s23 }
  0x14   : > { %s780_s9 = smul.u32 (%p46_p3), 24, %s207_s7 }
  0x15   : > { %s211_s10 = sadd.s32 (%p46_p3), %s909_s22, %s781_s8 }
  0x16   : > { %s765_s11 = sshll.u32 (%p46_p3), %s211_s10, 3  ;;  %s209_s15 = scalar_lea.vmem (%p46_p3), [#allocation6], %s780_s9 }
  0x17   : > { %s213_s14 = scalar_lea.vmem (%p46_p3), %s1174_s0, %s765_s11 }
  0x18   : > { %v245_v0 = vld [vmem:[%s213_s14] sm:$0xff] (%p46_p3)  ;;  %v247_v1 = vld [vmem:[%s213_s14 + $0x10] sm:$0xff] (%p46_p3) }
  0x19   : > { %v249_v2 = vld [vmem:[%s213_s14 + $0x20] sm:$0xff]  ;;  %246 = vst [vmem:[%s209_s15] sm:$0xff] %v245_v0  ;;  %248 = vst [vmem:[%s209_s15 + $0x8] sm:$0xff] %v247_v1 }
  0x1a   : > { %250 = vst [vmem:[%s209_s15 + $0x10] sm:$0xff] %v249_v2 }
  0x1b PF: > { %p766_p7 = scmp.ge.s32.totalorder %s917_s24, 1  ;;  %p265_p8 = scmp.lt.s32.totalorder %s917_s24, 5 }
  0x1d   : > { %p266_p9 = pnand %p766_p7, %p265_p8 }
  0x1e   : > { %s272_s16 = sand.u32 (!%p266_p9), 1, %s893_s18   ;;  %p321_p10 = scmp.lt.s32.totalorder (!%p266_p9), %s905_s21, 1 }
  0x1f   : > { %269 = sbr.rel (%p266_p9) target bundleno = 304 (0x130), region = 62  ;;  %p323_p11 = scmp.lt.s32.totalorder (!%p266_p9), %s901_s20, 1 }
  0x20   : > { %s782_s17 = smul.u32 (!%p266_p9), 24, %s272_s16  ;;  %p772_p12 = scmp.ne.s32.totalorder (!%p266_p9), %s901_s20, 0 }
  0x26   : > { %s1193_s21 = smov (!%p321_p10, %s905_s21), 1  ;;  %351 = sbr.rel (%p772_p12) target bundleno = 47 (0x2f), region = 70 }
  0x27   : > { %s324_s27 = scalar_select %p323_p11, %s901_s20, 1 }
  0x28   : > { %s767_s28 = sshll.u32 %s1193_s21, 1  ;;  %s783_s29 = smul.u32 24, %s1193_s21  ;;  %vm352_vm0 = vcmask (!%p772_p12), 7168   ;;  %vm355_vm1 = vcmask (!%p772_p12), 3072   ;;  %v919_v3 = vmov (!%p772_p12), 0.0  }
  0x29   : > { %s1019_s30 = sadd.s32 %s767_s28, %s324_s27  ;;  %353 = vst.msk [vmem:[#allocation2] sm:$0xff] (!%p772_p12), %vm352_vm0, %v919_v3  ;;  %354 = vst.msk [vmem:[#allocation2 + $0x8] sm:$0xff] (!%p772_p12), %vm352_vm0, %v919_v3 }
  0x2a   : > { %s327_s9 = scalar_lea.vmem %s1175_s1, %s1019_s30  ;;  %s1028_s12 = scalar_lea.vmem %s1176_s2, %s783_s29  ;;  %357 = vst.msk [vmem:[#allocation3] sm:$0xff] (!%p772_p12), %vm352_vm0, %v919_v3  ;;  %358 = vst.msk [vmem:[#allocation3 + $0x8] sm:$0xff] (!%p772_p12), %vm352_vm0, %v919_v3 }
  0x2b   : > { %s1033_s14 = scalar_lea.vmem %s1177_s3, %s783_s29  ;;  %s1038_s21 = scalar_lea.vmem %s1178_s4, %s783_s29  ;;  %360 = vst.msk [vmem:[#allocation4] sm:$0xff] (!%p772_p12), %vm352_vm0, %v919_v3  ;;  %361 = vst.msk [vmem:[#allocation4 + $0x8] sm:$0xff] (!%p772_p12), %vm352_vm0, %v919_v3 }
  0x2c   : > { %s1043_s7 = scalar_lea.vmem %s1179_s5, %s783_s29  ;;  %s274_s30 = scalar_lea.vmem [#allocation6], %s782_s17  ;;  %363 = vst.msk [vmem:[#allocation5] sm:$0xff] (!%p772_p12), %vm352_vm0, %v919_v3  ;;  %364 = vst.msk [vmem:[#allocation5 + $0x8] sm:$0xff] (!%p772_p12), %vm352_vm0, %v919_v3 }
  0x2d   : > { %356 = vst.msk [vmem:[#allocation2 + $0x10] sm:$0xf] %vm355_vm1, %v919_v3  ;;  %359 = vst.msk [vmem:[#allocation3 + $0x10] sm:$0xf] %vm355_vm1, %v919_v3 }
  0x2e   : > { %362 = vst.msk [vmem:[#allocation4 + $0x10] sm:$0xf] %vm355_vm1, %v919_v3  ;;  %365 = vst.msk [vmem:[#allocation5 + $0x10] sm:$0xf] %vm355_vm1, %v919_v3 }
  0x2f PF: > { %v411_v4 = vlaneseq  ;;  %vm370_vm2 = vcmask 1043456   ;;  %v366_v5 = vld [vmem:[%s274_s30] sm:$0xff]  ;;  %v367_v6 = vld [vmem:[%s274_s30 + $0x8] sm:$0xff]  ;;  %v368_v8 = vld [vmem:[%s274_s30 + $0x10] sm:$0xf]  ;;  %v920_v15 = vmov 0.0  }
  0x30   : > { %v1046_v7 = vld [vmem:[%s327_s9] ss:$0 sm:$0xff]  ;;  %v372_v9 = vmax.f32 %v366_v5, %v367_v6  ;;  %v371_v11 = vsel %vm370_vm2, %v368_v8, -inf  ;;  %vm492_vm12 = vcmask 7168   ;;  %vm495_vm13 = vcmask 3072   ;;  %p777_p13 = scmp.ne.s32.totalorder %s901_s20, 1 }
  0x31   : > { %v1048_v10 = vshrl.u32 %v411_v4, 7 }
  0x32   : > { %v373_v12 = vmax.f32 %v372_v9, %v371_v11 }
  0x33   : > { %v1052_v13 = vadd.s32 8, %v1048_v10  ;;  %vm419_vm3 = vcmp.eq.s32.totalorder %v1048_v10, %v1046_v7  ;;  %v1057_v14 = vadd.s32 16, %v1048_v10 }
  0x34   : > { %v774_v16 = vsel %vm419_vm3, 1.0, %v920_v15  ;;  %v374_v17 = vrot.slane %v373_v12, 4 }
  0x35   : > { %vm420_vm4 = vcmp.eq.s32.totalorder %v1052_v13, %v1046_v7  ;;  %516 = vadd.xlane.f32.xlu0 %v774_v16  ;;  %vm421_vm5 = vcmp.eq.s32.totalorder %v1057_v14, %v1046_v7  ;;  %v513_v7 = vld [vmem:[#allocation4] sm:$0xff]  ;;  %v514_v13 = vld [vmem:[#allocation4 + $0x8] sm:$0xff] }
  0x36   : > { %v775_v18 = vsel %vm420_vm4, 1.0, %v920_v15  ;;  %v776_v19 = vsel %vm421_vm5, 1.0, %v920_v15  ;;  %v375_v20 = vmax.f32 %v373_v12, %v374_v17 }
  0x37   : > { %518 = vadd.xlane.f32.xlu1 %v775_v18  ;;  %v520_v21 = vsel %vm370_vm2, %v776_v19, 0.0  ;;  %v921_v18 = vmov -0.4  }
  0x38   : > { %v376_v22 = vrot.slane %v375_v20, 2  ;;  %v428_v19 = vsel %vm419_vm3, -0.6, %v921_v18  ;;  %v429_v14 = vsel %vm420_vm4, -0.6, %v921_v18 }
  0x39   : > { %521 = vadd.xlane.f32.xlu0 %v520_v21 }
  0x3a   : > { %v377_v23 = vmax.f32 %v375_v20, %v376_v22  ;;  %v430_v20 = vsel %vm421_vm5, -0.6, %v921_v18 }
  0x3c   : > { %v378_v24 = vrot.slane %v377_v23, 1 }
  0x3e   : > { %v379_v25 = vmax.f32 %v377_v23, %v378_v24 }
  0x40   : > { %v380_v26 = vsub.f32 %v366_v5, %v379_v25  ;;  %v381_v27 = vsub.f32 %v367_v6, %v379_v25  ;;  %v382_v28 = vsub.f32 %v368_v8, %v379_v25 }
  0x42   : > { %v383_v29 = vmul.f32 1.442695, %v380_v26  ;;  %v385_v30 = vmul.f32 1.442695, %v381_v27  ;;  %v387_v31 = vmul.f32 1.442695, %v382_v28 }
  0x44   : > { %843 = vpow2.f32 %v383_v29 }
  0x45   : > { %845 = vpow2.f32 %v385_v30 }
  0x46   : > { %847 = vpow2.f32 %v387_v31 }
  0x4e   : > { %v844_v32 = vpop.eup %843 }
  0x4f   : > { %v846_v33 = vpop.eup %845 }
  0x50   : > { %v848_v34 = vpop.eup %847  ;;  %v389_v35 = vadd.f32 %v846_v33, %v844_v32 }
  0x51   : > { %v390_v36 = vsel %vm370_vm2, %v848_v34, 0.0 }
  0x52   : > { %v391_v37 = vadd.f32 %v390_v36, %v389_v35 }
  0x54   : > { %v392_v38 = vrot.slane %v391_v37, 4 }
  0x56   : > { %v393_v39 = vadd.f32 %v392_v38, %v391_v37 }
  0x58   : > { %v394_v40 = vrot.slane %v393_v39, 2 }
  0x5a   : > { %v395_v41 = vadd.f32 %v394_v40, %v393_v39 }
  0x5c   : > { %v396_v42 = vrot.slane %v395_v41, 1 }
  0x5e   : > { %v397_v43 = vadd.f32 %v396_v42, %v395_v41 }
  0x60   : > { %849 = vrcp.f32 %v397_v43 }
  0x6a   : > { %v850_v44 = vpop.eup %849 }
  0x6b   : > { %v399_v45 = vmul.f32 %v850_v44, %v397_v43 }
  0x6d   : > { %v400_v46 = vsub.f32 2.0, %v399_v45 }
  0x6f   : > { %v401_v47 = vmul.f32 %v850_v44, %v400_v46 }
  0x71   : > { %v402_v48 = vmul.f32 %v844_v32, %v401_v47  ;;  %v403_v49 = vmul.f32 %v846_v33, %v401_v47  ;;  %v404_v50 = vmul.f32 %v848_v34, %v401_v47  ;;  %v515_v47 = vld [vmem:[#allocation4 + $0x10] sm:$0xf] }
  0x73   : > { %v405_v51 = vmax.f32 %v402_v48, 1e-06  ;;  %v406_v52 = vmax.f32 %v403_v49, 1e-06  ;;  %v407_v53 = vmax.f32 %v404_v50, 1e-06 }
  0x75   : > { %v408_v54 = vmin.f32 %v405_v51, 0.999999  ;;  %v1074_v55 = vmin.f32 %v406_v52, 0.999999  ;;  %v1076_v56 = vmin.f32 %v407_v53, 0.999999 }
  0x76   : > { %v529_v51 = vld [vmem:[#allocation5] sm:$0xff]  ;;  %v498_v52 = vld [vmem:[#allocation3 + $0x8] sm:$0xff] }
  0x77   : > { %532 = vadd.xlane.f32.xlu1 %v408_v54  ;;  %v477_v57 = vsel %vm420_vm4, %v1074_v55, 0.0  ;;  %v422_v58 = vsub.f32 1.0, %v408_v54  ;;  %v476_v59 = vsel %vm419_vm3, %v408_v54, 0.0  ;;  %v424_v60 = vsub.f32 1.0, %v1076_v56 }
  0x78   : > { %502 = vadd.xlane.f32.xlu0 %v477_v57  ;;  %v423_v61 = vsub.f32 1.0, %v1074_v55  ;;  %v478_v62 = vsel %vm421_vm5, %v1076_v56, 0.0  ;;  %v536_v43 = vsel %vm370_vm2, %v1076_v56, 0.0  ;;  %v497_v57 = vld [vmem:[#allocation3] sm:$0xff] }
  0x79   : > { %v425_v63 = vsel %vm419_vm3, %v408_v54, %v422_v58  ;;  %v427_v2 = vsel %vm421_vm5, %v1076_v56, %v424_v60  ;;  %v504_v6 = vsel %vm370_vm2, %v478_v62, 0.0  ;;  %v499_v60 = vld [vmem:[#allocation3 + $0x10] sm:$0xf] }
  0x7a   : > { %v431_v0 = vsub.f32 1.0, %v425_v63  ;;  %v458_v1 = vadd.f32 1e-06, %v425_v63  ;;  %v426_v3 = vsel %vm420_vm4, %v1074_v55, %v423_v61  ;;  %v433_v4 = vsub.f32 1.0, %v427_v2  ;;  %v479_v63 = vld [vmem:[#allocation2] sm:$0xff] }
  0x7b   : > { %500 = vadd.xlane.f32.xlu1 %v476_v59  ;;  %v460_v5 = vadd.f32 1e-06, %v427_v2  ;;  %v432_v8 = vsub.f32 1.0, %v426_v3  ;;  %v459_v9 = vadd.f32 1e-06, %v426_v3  ;;  %v480_v3 = vld [vmem:[#allocation2 + $0x8] sm:$0xff] }
  0x7c   : > { %851 = vrsqrt.f32 %v431_v0  ;;  %vm436_vm6 = vcmp.eq.f32.partialorder %v431_v0, inf  ;;  %v439_v12 = vand.u32 2147483648, %v431_v0  ;;  %vm438_vm7 = vcmp.eq.f32.partialorder %v431_v0, 0.0  ;;  %v481_v2 = vld [vmem:[#allocation2 + $0x10] sm:$0xf] }
  0x7d   : > { %853 = vlog2.f32 %v458_v1  ;;  %vm450_vm8 = vcmp.eq.f32.partialorder %v433_v4, inf  ;;  %v453_v21 = vand.u32 2147483648, %v433_v4  ;;  %vm452_vm9 = vcmp.eq.f32.partialorder %v433_v4, 0.0 }
  0x7e   : > { %855 = vrsqrt.f32 %v433_v4  ;;  %vm443_vm10 = vcmp.eq.f32.partialorder %v432_v8, inf  ;;  %vm445_vm11 = vcmp.eq.f32.partialorder %v432_v8, 0.0  ;;  %v446_v28 = vand.u32 2147483648, %v432_v8 }
  0x7f   : > { %505 = vadd.xlane.f32.xlu1 %v504_v6  ;;  %857 = vlog2.f32 %v460_v5 }
  0x80   : > { %859 = vrsqrt.f32 %v432_v8 }
  0x81   : > { %861 = vlog2.f32 %v459_v9  ;;  %v531_v9 = vld [vmem:[#allocation5 + $0x10] sm:$0xf] }
  0x86   : > { %v852_v11 = vpop.eup %851 }
  0x87   : > { %v854_v15 = vpop.eup %853  ;;  %v435_v16 = vmul.f32 %v852_v11, %v431_v0  ;;  %v530_v11 = vld [vmem:[#allocation5 + $0x8] sm:$0xff] }
  0x88   : > { %v856_v17 = vpop.eup %855  ;;  %v462_v24 = vmul.f32 0.6931472, %v854_v15 }
  0x89   : > { %v858_v22 = vpop.eup %857  ;;  %v437_v23 = vsel %vm436_vm6, %v431_v0, %v435_v16  ;;  %v449_v25 = vmul.f32 %v856_v17, %v433_v4 }
  0x8a   : > { %v860_v26 = vpop.eup %859  ;;  %v440_v27 = vsel %vm438_vm7, %v439_v12, %v437_v23  ;;  %v466_v31 = vmul.f32 0.6931472, %v858_v22 }
  0x8b   : > { %v862_v29 = vpop.eup %861  ;;  %v455_v30 = vmul.f32 %v440_v27, %v428_v19  ;;  %v451_v10 = vsel %vm450_vm8, %v433_v4, %v449_v25  ;;  %v442_v32 = vmul.f32 %v860_v26, %v432_v8 }
  0x8c   : > { %v454_v33 = vsel %vm452_vm9, %v453_v21, %v451_v10  ;;  %v464_v37 = vmul.f32 0.6931472, %v862_v29 }
  0x8d   : > { %v467_v34 = vmul.f32 %v462_v24, %v455_v30  ;;  %v457_v35 = vmul.f32 %v454_v33, %v430_v20  ;;  %v444_v36 = vsel %vm443_vm10, %v432_v8, %v442_v32 }
  0x8e   : > { %v447_v38 = vsel %vm445_vm11, %v446_v28, %v444_v36 }
  0x8f   : > { %482 = vadd.xlane.f32.xlu0 %v467_v34  ;;  %v469_v39 = vmul.f32 %v466_v31, %v457_v35  ;;  %v456_v40 = vmul.f32 %v447_v38, %v429_v14 }
  0x91   : > { %v486_v41 = vsel %vm370_vm2, %v469_v39, 0.0  ;;  %v468_v42 = vmul.f32 %v464_v37, %v456_v40 }
  0x92   : > { %487 = vadd.xlane.f32.xlu1 %v486_v41 }
  0x93   : > { %484 = vadd.xlane.f32.xlu0 %v468_v42 }
  0x96   : > { %537 = vadd.xlane.f32.xlu1 %v536_v43 }
  0x97   : > { %534 = vadd.xlane.f32.xlu0 %v1074_v55 }
  0xc2   : > { %v517_v44 = vpop.xlane.xlu0 %516 }
  0xc3   : > { %v523_v45 = vadd.f32 %v517_v44, %v513_v7 }
  0xc4   : > { %v519_v46 = vpop.xlane.xlu1 %518 }
  0xc5   : > { %v524_v48 = vadd.f32 %v519_v46, %v514_v13  ;;  %526 = vst.msk [vmem:[#allocation4] sm:$0xff] %vm492_vm12, %v523_v45 }
  0xc6   : > { %v522_v49 = vpop.xlane.xlu0 %521 }
  0xc7   : > { %527 = vst.msk [vmem:[#allocation4 + $0x8] sm:$0xff] %vm492_vm12, %v524_v48  ;;  %v525_v50 = vadd.f32 %v522_v49, %v515_v47 }
  0xc9   : > { %528 = vst.msk [vmem:[#allocation4 + $0x10] sm:$0xf] %vm495_vm13, %v525_v50 }
  0xcc   : > { %v561_v24 = vld [vmem:[#allocation4] sm:$0xff] (!%p777_p13) }
  0xcd   : > { %564 = vst.msk [vmem:[%s1038_s21] sm:$0xff] (!%p777_p13), %vm492_vm12, %v561_v24 }
  0xce   : > { %v562_v25 = vld [vmem:[#allocation4 + $0x8] sm:$0xff] (!%p777_p13) }
  0xcf   : > { %565 = vst.msk [vmem:[%s1038_s21 + $0x8] sm:$0xff] (!%p777_p13), %vm492_vm12, %v562_v25 }
  0xd0   : > { %v563_v26 = vld [vmem:[#allocation4 + $0x10] sm:$0xf] (!%p777_p13) }
  0xd1   : > { %566 = vst.msk [vmem:[%s1038_s21 + $0x10] sm:$0xf] (!%p777_p13), %vm495_vm13, %v563_v26 }
 0x104   : > { %v533_v53 = vpop.xlane.xlu1 %532 }
 0x105   : > { %v539_v54 = vadd.f32 %v533_v53, %v529_v51  ;;  %v503_v55 = vpop.xlane.xlu0 %502 }
 0x106   : > { %v508_v56 = vadd.f32 %v503_v55, %v498_v52 }
 0x107   : > { %542 = vst.msk [vmem:[#allocation5] sm:$0xff] %vm492_vm12, %v539_v54 }
 0x108   : > { %511 = vst.msk [vmem:[#allocation3 + $0x8] sm:$0xff] %vm492_vm12, %v508_v56  ;;  %v501_v58 = vpop.xlane.xlu1 %500 }
 0x109   : > { %v507_v59 = vadd.f32 %v501_v58, %v497_v57 }
 0x10b   : > { %510 = vst.msk [vmem:[#allocation3] sm:$0xff] %vm492_vm12, %v507_v59 }
 0x10c   : > { %v506_v61 = vpop.xlane.xlu1 %505 }
 0x10d   : > { %v509_v62 = vadd.f32 %v506_v61, %v499_v60 }
 0x10e   : > { %v567_v27 = vld [vmem:[#allocation5] sm:$0xff] (!%p777_p13) }
 0x10f   : > { %512 = vst.msk [vmem:[#allocation3 + $0x10] sm:$0xf] %vm495_vm13, %v509_v62  ;;  %v556_v22 = vld [vmem:[#allocation3 + $0x8] sm:$0xff] (!%p777_p13) }
 0x110   : > { %559 = vst.msk [vmem:[%s1033_s14 + $0x8] sm:$0xff] (!%p777_p13), %vm492_vm12, %v556_v22  ;;  %570 = vst.msk [vmem:[%s1043_s7] sm:$0xff] (!%p777_p13), %vm492_vm12, %v567_v27 }
 0x112   : > { %v555_v21 = vld [vmem:[#allocation3] sm:$0xff] (!%p777_p13) }
 0x113   : > { %558 = vst.msk [vmem:[%s1033_s14] sm:$0xff] (!%p777_p13), %vm492_vm12, %v555_v21 }
 0x116   : > { %v557_v23 = vld [vmem:[#allocation3 + $0x10] sm:$0xf] (!%p777_p13) }
 0x117   : > { %560 = vst.msk [vmem:[%s1033_s14 + $0x10] sm:$0xf] (!%p777_p13), %vm495_vm13, %v557_v23 }
 0x11c   : > { %v483_v0 = vpop.xlane.xlu0 %482 }
 0x11d   : > { %v489_v1 = vadd.f32 %v483_v0, %v479_v63 }
 0x11f   : > { %493 = vst.msk [vmem:[#allocation2] sm:$0xff] %vm492_vm12, %v489_v1  ;;  %v488_v4 = vpop.xlane.xlu1 %487 }
 0x120   : > { %v491_v5 = vadd.f32 %v488_v4, %v481_v2  ;;  %v485_v6 = vpop.xlane.xlu0 %484 }
 0x121   : > { %v490_v8 = vadd.f32 %v485_v6, %v480_v3  ;;  %548 = sbr.rel (%p777_p13) target bundleno = 304 (0x130), region = 74 }
 0x122   : > { %496 = vst.msk [vmem:[#allocation2 + $0x10] sm:$0xf] %vm495_vm13, %v491_v5 }
 0x123   : > { %494 = vst.msk [vmem:[#allocation2 + $0x8] sm:$0xff] %vm492_vm12, %v490_v8  ;;  %v538_v12 = vpop.xlane.xlu1 %537 }
 0x124   : > { %v541_v15 = vadd.f32 %v538_v12, %v531_v9  ;;  %v535_v16 = vpop.xlane.xlu0 %534 }
 0x125   : > { %v540_v17 = vadd.f32 %v535_v16, %v530_v11 }
 0x126   : > { %544 = vst.msk [vmem:[#allocation5 + $0x10] sm:$0xf] %vm495_vm13, %v541_v15  ;;  %v549_v18 = vld [vmem:[#allocation2] sm:$0xff] (!%p777_p13) }
 0x127   : > { %543 = vst.msk [vmem:[#allocation5 + $0x8] sm:$0xff] %vm492_vm12, %v540_v17  ;;  %552 = vst.msk [vmem:[%s1028_s12] sm:$0xff] (!%p777_p13), %vm492_vm12, %v549_v18 }
 0x129   : > { %v551_v20 = vld [vmem:[#allocation2 + $0x10] sm:$0xf] }
 0x12a   : > { %v550_v19 = vld [vmem:[#allocation2 + $0x8] sm:$0xff]  ;;  %554 = vst.msk [vmem:[%s1028_s12 + $0x10] sm:$0xf] %vm495_vm13, %v551_v20 }
 0x12b   : > { %553 = vst.msk [vmem:[%s1028_s12 + $0x8] sm:$0xff] %vm492_vm12, %v550_v19 }
 0x12d   : > { %v569_v29 = vld [vmem:[#allocation5 + $0x10] sm:$0xf] }
 0x12e   : > { %v568_v28 = vld [vmem:[#allocation5 + $0x8] sm:$0xff]  ;;  %572 = vst.msk [vmem:[%s1043_s7 + $0x10] sm:$0xf] %vm495_vm13, %v569_v29 }
 0x12f   : > { %571 = vst.msk [vmem:[%s1043_s7 + $0x8] sm:$0xff] %vm492_vm12, %v568_v28 }
 0x130 PF: > { %s16_s24 = sadd.s32 1, %s917_s24   ;;  %s1180_s18 = smov %s897_s19 }
 0x131   : > { %p13_p0 = scmp.ge.s32.totalorder %s16_s24, 6   ;;  %s1181_s19 = smov %s1003_s6 }
 0x132   : > { %s1182_s20 = smov %s909_s22  ;;  %s1183_s21 = smov %s913_s23 }
 0x133   : > { %s1184_s22 = smov %s1187_s25  ;;  %s1185_s23 = smov %s1191_s26 }
 0x134   :  { %15 = sbr.rel (!%p13_p0) target bundleno = 4 (0x4), region = 148 }

</bundles_post_ra>
